<compile_context>
chip_gen: v7x
topology: tpu7x:2x2x1
jax: 0.10.0
libtpu: 0.0.40
codegen_flags: <defaults>
</compile_context>

<pallas_src>
import functools

import jax
import jax.numpy as jnp
from jax.experimental import pallas as pl
from jax.experimental.pallas import tpu as pltpu

LANE = 128
MAX_STREAM_BYTES_PER_STEP = 2 * 1024 * 1024  # ~2 MiB per input stream per grid step


def _dice_bce_kernel(x_ref, t_ref, o_ref,
                     inter_acc, denom_acc, bce_acc,
                     *, block_rows, valid_rows_last, needs_mask):
    c = pl.program_id(0)          # parallel split axis
    i = pl.program_id(1)          # streaming (reduction) axis

    @pl.when(i == 0)
    def _init():
        inter_acc[...] = jnp.zeros_like(inter_acc)
        denom_acc[...] = jnp.zeros_like(denom_acc)
        bce_acc[...] = jnp.zeros_like(bce_acc)

    def fold(v):
        # (block_rows, 128) -> (8, 128): tiling-aligned view + pure VALU adds.
        return jnp.sum(v.reshape(-1, 8, LANE), axis=0)

    def accumulate(p, t):
        inter_acc[...] += fold(p * t)           # -> intersection
        denom_acc[...] += fold(p + t)           # -> inputs.sum() + targets.sum()
        log_p = jnp.maximum(jnp.log(p), -100.0)
        log_1mp = jnp.maximum(jnp.log(1.0 - p), -100.0)
        # -(t*log_p + (1-t)*log_1mp) == -(log_1mp + t*(log_p - log_1mp))
        bce_acc[...] -= fold(log_1mp + t * (log_p - log_1mp))

    # Widen in-kernel (VPU); HBM stream stays at native width (e.g. bf16).
    p = x_ref[...].astype(jnp.float32)
    t = t_ref[...].astype(jnp.float32)

    if needs_mask:
        is_last_global = jnp.logical_and(c == pl.num_programs(0) - 1,
                                         i == pl.num_programs(1) - 1)

        @pl.when(jnp.logical_not(is_last_global))
        def _full():
            accumulate(p, t)

        @pl.when(is_last_global)
        def _tail():
            # Rows past the array end contain unspecified VMEM data; zero them.
            # (p, t) = (0, 0) contributes exactly 0 to every partial sum.
            row = jax.lax.broadcasted_iota(jnp.int32, (block_rows, LANE), 0)
            valid = row < valid_rows_last
            accumulate(jnp.where(valid, p, 0.0), jnp.where(valid, t, 0.0))
    else:
        accumulate(p, t)

    @pl.when(i == pl.num_programs(1) - 1)
    def _finalize():
        o_ref[0, 0] = inter_acc[...]
        o_ref[0, 1] = denom_acc[...]
        o_ref[0, 2] = bce_acc[...]


def dice_bce_loss(inputs, targets, smooth=1e-07):
    x = jnp.reshape(inputs, (-1,))   # keep native dtype
    t = jnp.reshape(targets, (-1,))
    n = x.shape[0]

    # Only pad up to the next multiple of 128 (needed to view as (*, 128)).
    # Zero padding contributes exactly 0 to all partial sums.
    n_lane = pl.cdiv(n, LANE) * LANE
    if n_lane != n:
        # TODO(synk): the sub-128 tail still costs one jnp.pad copy; could be
        # avoided by handling the <128-element remainder separately.
        x = jnp.pad(x, (0, n_lane - n))
        t = jnp.pad(t, (0, n_lane - n))
    rows = n_lane // LANE
    x2 = x.reshape(rows, LANE)
    t2 = t.reshape(rows, LANE)

    # Dtype-aware block sizing: ~2 MiB per stream per step, rows rounded to the
    # sublane packing of the widest-packing input dtype.
    bx = jnp.dtype(x2.dtype).itemsize
    bt = jnp.dtype(t2.dtype).itemsize
    row_align = max(8 * (4 // bx), 8 * (4 // bt), 8)
    max_rows = max(row_align, MAX_STREAM_BYTES_PER_STEP // (LANE * max(bx, bt)))
    num_blocks_min = pl.cdiv(rows, max_rows)
    block_rows = pl.cdiv(pl.cdiv(rows, num_blocks_min), row_align) * row_align

    total_blocks = pl.cdiv(rows, block_rows)
    # 2-way core split (v7x megacore) when the block count divides evenly.
    num_splits = 2 if (total_blocks >= 2 and total_blocks % 2 == 0) else 1
    steps = total_blocks // num_splits

    valid_rows_last = rows - (total_blocks - 1) * block_rows
    needs_mask = valid_rows_last != block_rows

    tile_spec = pl.BlockSpec((block_rows, LANE),
                             lambda c, i: (c * steps + i, 0))

    parts = pl.pallas_call(
        functools.partial(_dice_bce_kernel,
                          block_rows=block_rows,
                          valid_rows_last=valid_rows_last,
                          needs_mask=needs_mask),
        out_shape=jax.ShapeDtypeStruct((num_splits, 3, 8, LANE), jnp.float32),
        grid_spec=pltpu.PrefetchScalarGridSpec(
            num_scalar_prefetch=0,
            grid=(num_splits, steps),
            in_specs=[tile_spec, tile_spec],
            out_specs=pl.BlockSpec((1, 3, 8, LANE), lambda c, i: (c, 0, 0, 0)),
            scratch_shapes=[pltpu.VMEM((8, LANE), jnp.float32)] * 3,
        ),
        compiler_params=pltpu.CompilerParams(
            dimension_semantics=("parallel", "arbitrary")),
    )(x2, t2)

    # Tiny epilogue: combine per-core partials, finish dice + bce-mean.
    sums = jnp.sum(parts, axis=(0, 2, 3))   # (3,) -> [inter, denom, bce_sum]
    inter, denom, bce_sum = sums[0], sums[1], sums[2]
    sm = jnp.float32(smooth)
    dice_loss = 1.0 - (2.0 * inter + sm) / (denom + sm)
    bce_mean = bce_sum / jnp.float32(n)
    return bce_mean + dice_loss


def _dice_bce_ref(inputs, targets, smooth=1e-07):
    p = jnp.reshape(inputs, (-1,)).astype(jnp.float32)
    t = jnp.reshape(targets, (-1,)).astype(jnp.float32)
    inter = jnp.sum(p * t)
    dice = 1.0 - (2.0 * inter + smooth) / (jnp.sum(p) + jnp.sum(t) + smooth)
    bce = jnp.mean(-(t * jnp.maximum(jnp.log(p), -100.0)
                     + (1.0 - t) * jnp.maximum(jnp.log(1.0 - p), -100.0)))
    return bce + dice


def _make_case(key, shape, dtype=jnp.float32):
    k1, k2 = jax.random.split(key)
    # inputs are probabilities (required by binary_cross_entropy); targets in {0,1}.
    inputs = jax.nn.sigmoid(jax.random.normal(k1, shape, dtype=jnp.float32)).astype(dtype)
    targets = jax.random.bernoulli(k2, 0.5, shape).astype(dtype)
    return inputs, targets


if __name__ == "__main__":
    key = jax.random.PRNGKey(0)
    k_a, k_b, k_c = jax.random.split(key, 3)

    # Primary case from the module spec: (N, C, H, W) = (2, 4, 16, 16).
    inp_a, tgt_a = _make_case(k_a, (2, 4, 16, 16))
    loss_a = jax.block_until_ready(dice_bce_loss(inp_a, tgt_a))
    ref_a = _dice_bce_ref(inp_a, tgt_a)
    assert jnp.allclose(loss_a, ref_a, rtol=1e-4, atol=1e-5), (loss_a, ref_a)

    # Unaligned size -> exercises the in-kernel tail-mask path.
    inp_b, tgt_b = _make_case(k_b, (3, 5, 7, 11))
    loss_b = jax.block_until_ready(dice_bce_loss(inp_b, tgt_b))
    ref_b = _dice_bce_ref(inp_b, tgt_b)
    assert jnp.allclose(loss_b, ref_b, rtol=1e-4, atol=1e-5), (loss_b, ref_b)

    # Larger size -> exercises the multi-block / 2-way parallel-split path.
    inp_c, tgt_c = _make_case(k_c, (1, 1, 1024, 1024))
    loss_c = jax.block_until_ready(dice_bce_loss(inp_c, tgt_c))
    ref_c = _dice_bce_ref(inp_c, tgt_c)
    assert jnp.allclose(loss_c, ref_c, rtol=1e-4, atol=1e-5), (loss_c, ref_c)

    print("KERNEL_OK")
</pallas_src>

<mosaic_0001>
module attributes {stable_mosaic.version = 11 : i64} {
  func.func @_dice_bce_kernel(%arg0: i32, %arg1: i32, %arg2: memref<16x128xf32, #tpu.memory_space<vmem>>, %arg3: memref<16x128xf32, #tpu.memory_space<vmem>>, %arg4: memref<1x3x8x128xf32, #tpu.memory_space<vmem>>, %arg5: memref<8x128xf32, #tpu.memory_space<vmem>>, %arg6: memref<8x128xf32, #tpu.memory_space<vmem>>, %arg7: memref<8x128xf32, #tpu.memory_space<vmem>>) attributes {dimension_semantics = [#tpu.dimension_semantics<parallel>, #tpu.dimension_semantics<arbitrary>], iteration_bounds = array<i64: 1, 1>, scalar_prefetch = 0 : i64, scratch_operands = 3 : i64, tpu.core_type = #tpu.core_type<tc>, window_params = [{transform_indices = @transform_0, window_bounds = array<i64: 16, 128>}, {transform_indices = @transform_1, window_bounds = array<i64: 16, 128>}, {transform_indices = @transform_2, window_bounds = array<i64: 1, 3, 8, 128>}]} {
    %c0_i32 = arith.constant 0 : i32
    %0 = arith.cmpi eq, %arg1, %c0_i32 : i32
    %1 = arith.extui %0 : i1 to i32
    %c0_i32_0 = arith.constant 0 : i32
    %2 = arith.cmpi ne, %1, %c0_i32_0 : i32
    scf.if %2 {
      %cst_23 = arith.constant 0.000000e+00 : f32
      %36 = vector.broadcast %cst_23 : f32 to vector<8x128xf32>
      %c0_24 = arith.constant 0 : index
      %c0_25 = arith.constant 0 : index
      %37 = vector.load %arg5[%c0_24, %c0_25] : memref<8x128xf32, #tpu.memory_space<vmem>>, vector<8x128xf32>
      tpu.vector_store %arg5[%c0_24, %c0_25], %36 {strides = array<i32>} : memref<8x128xf32, #tpu.memory_space<vmem>>, vector<8x128xf32>,
      %cst_26 = arith.constant 0.000000e+00 : f32
      %38 = vector.broadcast %cst_26 : f32 to vector<8x128xf32>
      %c0_27 = arith.constant 0 : index
      %c0_28 = arith.constant 0 : index
      %39 = vector.load %arg6[%c0_27, %c0_28] : memref<8x128xf32, #tpu.memory_space<vmem>>, vector<8x128xf32>
      tpu.vector_store %arg6[%c0_27, %c0_28], %38 {strides = array<i32>} : memref<8x128xf32, #tpu.memory_space<vmem>>, vector<8x128xf32>,
      %cst_29 = arith.constant 0.000000e+00 : f32
      %40 = vector.broadcast %cst_29 : f32 to vector<8x128xf32>
      %c0_30 = arith.constant 0 : index
      %c0_31 = arith.constant 0 : index
      %41 = vector.load %arg7[%c0_30, %c0_31] : memref<8x128xf32, #tpu.memory_space<vmem>>, vector<8x128xf32>
      tpu.vector_store %arg7[%c0_30, %c0_31], %40 {strides = array<i32>} : memref<8x128xf32, #tpu.memory_space<vmem>>, vector<8x128xf32>,
    } else {
    }
    %c0 = arith.constant 0 : index
    %c0_1 = arith.constant 0 : index
    %3 = vector.load %arg2[%c0, %c0_1] : memref<16x128xf32, #tpu.memory_space<vmem>>, vector<16x128xf32>
    %c0_2 = arith.constant 0 : index
    %c0_3 = arith.constant 0 : index
    %4 = vector.load %arg3[%c0_2, %c0_3] : memref<16x128xf32, #tpu.memory_space<vmem>>, vector<16x128xf32>
    %c0_4 = arith.constant 0 : index
    %c0_5 = arith.constant 0 : index
    %5 = vector.load %arg5[%c0_4, %c0_5] : memref<8x128xf32, #tpu.memory_space<vmem>>, vector<8x128xf32>
    %6 = arith.mulf %3, %4 : vector<16x128xf32>
    %7 = vector.shape_cast %6 : vector<16x128xf32> to vector<2x8x128xf32>
    %cst = arith.constant dense<0.000000e+00> : vector<8x128xf32>
    %8 = vector.multi_reduction <add>, %7, %cst [0] : vector<2x8x128xf32> to vector<8x128xf32>
    %9 = arith.addf %5, %8 : vector<8x128xf32>
    %c0_6 = arith.constant 0 : index
    %c0_7 = arith.constant 0 : index
    %10 = vector.load %arg5[%c0_6, %c0_7] : memref<8x128xf32, #tpu.memory_space<vmem>>, vector<8x128xf32>
    tpu.vector_store %arg5[%c0_6, %c0_7], %9 {strides = array<i32>} : memref<8x128xf32, #tpu.memory_space<vmem>>, vector<8x128xf32>,
    %c0_8 = arith.constant 0 : index
    %c0_9 = arith.constant 0 : index
    %11 = vector.load %arg6[%c0_8, %c0_9] : memref<8x128xf32, #tpu.memory_space<vmem>>, vector<8x128xf32>
    %12 = arith.addf %3, %4 : vector<16x128xf32>
    %13 = vector.shape_cast %12 : vector<16x128xf32> to vector<2x8x128xf32>
    %cst_10 = arith.constant dense<0.000000e+00> : vector<8x128xf32>
    %14 = vector.multi_reduction <add>, %13, %cst_10 [0] : vector<2x8x128xf32> to vector<8x128xf32>
    %15 = arith.addf %11, %14 : vector<8x128xf32>
    %c0_11 = arith.constant 0 : index
    %c0_12 = arith.constant 0 : index
    %16 = vector.load %arg6[%c0_11, %c0_12] : memref<8x128xf32, #tpu.memory_space<vmem>>, vector<8x128xf32>
    tpu.vector_store %arg6[%c0_11, %c0_12], %15 {strides = array<i32>} : memref<8x128xf32, #tpu.memory_space<vmem>>, vector<8x128xf32>,
    %17 = math.log %3 : vector<16x128xf32>
    %cst_13 = arith.constant -1.000000e+02 : f32
    %18 = vector.broadcast %cst_13 : f32 to vector<16x128xf32>
    %19 = arith.maximumf %17, %18 : vector<16x128xf32>
    %cst_14 = arith.constant 1.000000e+00 : f32
    %20 = vector.broadcast %cst_14 : f32 to vector<16x128xf32>
    %21 = arith.subf %20, %3 : vector<16x128xf32>
    %22 = math.log %21 : vector<16x128xf32>
    %cst_15 = arith.constant -1.000000e+02 : f32
    %23 = vector.broadcast %cst_15 : f32 to vector<16x128xf32>
    %24 = arith.maximumf %22, %23 : vector<16x128xf32>
    %c0_16 = arith.constant 0 : index
    %c0_17 = arith.constant 0 : index
    %25 = vector.load %arg7[%c0_16, %c0_17] : memref<8x128xf32, #tpu.memory_space<vmem>>, vector<8x128xf32>
    %26 = arith.subf %19, %24 : vector<16x128xf32>
    %27 = arith.mulf %4, %26 : vector<16x128xf32>
    %28 = arith.addf %24, %27 : vector<16x128xf32>
    %29 = vector.shape_cast %28 : vector<16x128xf32> to vector<2x8x128xf32>
    %cst_18 = arith.constant dense<0.000000e+00> : vector<8x128xf32>
    %30 = vector.multi_reduction <add>, %29, %cst_18 [0] : vector<2x8x128xf32> to vector<8x128xf32>
    %31 = arith.subf %25, %30 : vector<8x128xf32>
    %c0_19 = arith.constant 0 : index
    %c0_20 = arith.constant 0 : index
    %32 = vector.load %arg7[%c0_19, %c0_20] : memref<8x128xf32, #tpu.memory_space<vmem>>, vector<8x128xf32>
    tpu.vector_store %arg7[%c0_19, %c0_20], %31 {strides = array<i32>} : memref<8x128xf32, #tpu.memory_space<vmem>>, vector<8x128xf32>,
    %c0_i32_21 = arith.constant 0 : i32
    %33 = arith.cmpi eq, %arg1, %c0_i32_21 : i32
    %34 = arith.extui %33 : i1 to i32
    %c0_i32_22 = arith.constant 0 : i32
    %35 = arith.cmpi ne, %34, %c0_i32_22 : i32
    scf.if %35 {
      %c0_23 = arith.constant 0 : index
      %c0_24 = arith.constant 0 : index
      %36 = vector.load %arg5[%c0_23, %c0_24] : memref<8x128xf32, #tpu.memory_space<vmem>>, vector<8x128xf32>
      %c0_25 = arith.constant 0 : index
      %c0_26 = arith.constant 0 : index
      %c0_27 = arith.constant 0 : index
      %c0_28 = arith.constant 0 : index
      %37 = vector.load %arg4[%c0_25, %c0_26, %c0_27, %c0_28] : memref<1x3x8x128xf32, #tpu.memory_space<vmem>>, vector<1x1x8x128xf32>
      %38 = vector.shape_cast %37 : vector<1x1x8x128xf32> to vector<8x128xf32>
      %39 = vector.shape_cast %36 : vector<8x128xf32> to vector<1x1x8x128xf32>
      tpu.vector_store %arg4[%c0_25, %c0_26, %c0_27, %c0_28], %39 {strides = array<i32>} : memref<1x3x8x128xf32, #tpu.memory_space<vmem>>, vector<1x1x8x128xf32>,
      %c0_29 = arith.constant 0 : index
      %c0_30 = arith.constant 0 : index
      %40 = vector.load %arg6[%c0_29, %c0_30] : memref<8x128xf32, #tpu.memory_space<vmem>>, vector<8x128xf32>
      %c0_31 = arith.constant 0 : index
      %c1 = arith.constant 1 : index
      %c0_32 = arith.constant 0 : index
      %c0_33 = arith.constant 0 : index
      %41 = vector.load %arg4[%c0_31, %c1, %c0_32, %c0_33] : memref<1x3x8x128xf32, #tpu.memory_space<vmem>>, vector<1x1x8x128xf32>
      %42 = vector.shape_cast %41 : vector<1x1x8x128xf32> to vector<8x128xf32>
      %43 = vector.shape_cast %40 : vector<8x128xf32> to vector<1x1x8x128xf32>
      tpu.vector_store %arg4[%c0_31, %c1, %c0_32, %c0_33], %43 {strides = array<i32>} : memref<1x3x8x128xf32, #tpu.memory_space<vmem>>, vector<1x1x8x128xf32>,
      %c0_34 = arith.constant 0 : index
      %c0_35 = arith.constant 0 : index
      %44 = vector.load %arg7[%c0_34, %c0_35] : memref<8x128xf32, #tpu.memory_space<vmem>>, vector<8x128xf32>
      %c0_36 = arith.constant 0 : index
      %c2 = arith.constant 2 : index
      %c0_37 = arith.constant 0 : index
      %c0_38 = arith.constant 0 : index
      %45 = vector.load %arg4[%c0_36, %c2, %c0_37, %c0_38] : memref<1x3x8x128xf32, #tpu.memory_space<vmem>>, vector<1x1x8x128xf32>
      %46 = vector.shape_cast %45 : vector<1x1x8x128xf32> to vector<8x128xf32>
      %47 = vector.shape_cast %44 : vector<8x128xf32> to vector<1x1x8x128xf32>
      tpu.vector_store %arg4[%c0_36, %c2, %c0_37, %c0_38], %47 {strides = array<i32>} : memref<1x3x8x128xf32, #tpu.memory_space<vmem>>, vector<1x1x8x128xf32>,
    } else {
    }
    return
  }
  func.func @transform_0(%arg0: i32, %arg1: i32) -> (i32, i32) {
    %c1_i32 = arith.constant 1 : i32
    %0 = arith.muli %arg0, %c1_i32 : i32
    %1 = arith.addi %0, %arg1 : i32
    %c0_i32 = arith.constant 0 : i32
    %c0_i32_0 = arith.constant 0 : i32
    return %1, %c0_i32 : i32, i32
  }
  func.func @transform_1(%arg0: i32, %arg1: i32) -> (i32, i32) {
    %c1_i32 = arith.constant 1 : i32
    %0 = arith.muli %arg0, %c1_i32 : i32
    %1 = arith.addi %0, %arg1 : i32
    %c0_i32 = arith.constant 0 : i32
    %c0_i32_0 = arith.constant 0 : i32
    return %1, %c0_i32 : i32, i32
  }
  func.func @transform_2(%arg0: i32, %arg1: i32) -> (i32, i32, i32, i32) {
    %c0_i32 = arith.constant 0 : i32
    %c0_i32_0 = arith.constant 0 : i32
    %c0_i32_1 = arith.constant 0 : i32
    %c0_i32_2 = arith.constant 0 : i32
    return %arg0, %c0_i32, %c0_i32_0, %c0_i32_1 : i32, i32, i32, i32
  }
}

</mosaic_0001>

<bundles_post_ra>
// kernel: tpu_custom_call.1
= control target key start
LH: loop header
LB: loop body
LE: loop exit
PB: predicated region body
PF: predicated region fallthrough
CT: control target
= control target key end

     0   :  { %7 = vsyncpa [#allocation6], 0  ;;  %s278_s0 = inlined_call_operand.hbm [shape: f32[16,128], index: 0, kind: input, shape index: {}]   ;;  %s279_s1 = inlined_call_operand.hbm [shape: f32[16,128], index: 1, kind: input, shape index: {}]   ;;  %s280_s2 = inlined_call_operand.hbm [shape: f32[1,3,8,128], index: 2, kind: output, shape index: {}]  }
   0x1   :  { %8 = vsyncpa [#allocation9], 0 }
   0x2   :  { %9 = vsyncpa [#allocation7], 0  ;;  %s213_s9 = smov [#allocation5]   ;;  %s141_s13 = scalar_lea.hbm %s278_s0, 256 }
   0x3   :  { %s19_s10 = sshll.u32 %s213_s9, 4  ;;  %p142_p0 = scmp.ne.s32.totalorder %s278_s0, %s141_s13  ;;  %s20_s10 = int_to_ptr.vmem [resolvable:$true] %s19_s10 }
   0x4   :  { %p145_p1 = scmp.lt.u32.totalorder %s141_s13, %s278_s0 }
   0x6   :  { %p147_p2 = pnand %p145_p1, %p142_p0 }
   0x8   :  { %150 = shalt.err (!%p147_p2)
}
   0x9   :  { %s151_s18 = scalar_lea.vmem %s20_s10, 256  ;;  %p156_p4 = scmp.lt.s32.totalorder %s20_s10, %s20_s10 }
   0xa   :  { %p152_p3 = scmp.ne.s32.totalorder %s20_s10, %s151_s18  ;;  %p157_p5 = scmp.lt.s32.totalorder %s151_s18, %s151_s18 }
   0xc   :  { %p158_p6 = por %p157_p5, %p156_p4 }
   0xe   :  { %p159_p7 = pnand %p158_p6, %p152_p3 }
  0x10   :  { %162 = shalt.err (!%p159_p7)
}
  0x11   :  { %s214_s19 = smov 128   ;;  %s215_s20 = smov 8  }
  0x12   :  { %25 = dma.hbm_to_vmem [thread:$0]  %s278_s0, 256, %s20_s10, [#allocation6], %s214_s19, %s214_s19, %s215_s20  }
  0x13   :  { %s216_s23 = smov [#allocation8]   ;;  %s163_s27 = scalar_lea.hbm %s279_s1, 256 }
  0x14   :  { %s35_s24 = sshll.u32 %s216_s23, 4  ;;  %p164_p8 = scmp.ne.s32.totalorder %s279_s1, %s163_s27  ;;  %s36_s24 = int_to_ptr.vmem [resolvable:$true] %s35_s24 }
  0x15   :  { %p167_p9 = scmp.lt.u32.totalorder %s163_s27, %s279_s1 }
  0x17   :  { %p169_p10 = pnand %p167_p9, %p164_p8 }
  0x19   :  { %172 = shalt.err (!%p169_p10)
}
  0x1a   :  { %s173_s4 = scalar_lea.vmem %s36_s24, 256  ;;  %p178_p12 = scmp.lt.s32.totalorder %s36_s24, %s36_s24 }
  0x1b   :  { %p174_p11 = scmp.ne.s32.totalorder %s36_s24, %s173_s4  ;;  %p179_p13 = scmp.lt.s32.totalorder %s173_s4, %s173_s4 }
  0x1d   :  { %p180_p0 = por %p179_p13, %p178_p12 }
  0x1f   :  { %p181_p1 = pnand %p180_p0, %p174_p11 }
  0x21   :  { %184 = shalt.err (!%p181_p1)
}
  0x22   :  { %41 = dma.hbm_to_vmem [thread:$0]  %s279_s1, 256, %s36_s24, [#allocation9], %s214_s19, %s214_s19, %s215_s20  }
  0x23   :  { %207 = dma.done.wait [#allocation6], 256  }
  0x24   :  { %208 = vsyncadd [#allocation6], 4294967040 }
  0x25   :  { %209 = dma.done.wait [#allocation9], 256  }
  0x26   :  { %210 = vsyncadd [#allocation9], 4294967040  ;;  %v59_v0 = vld [vmem:[#allocation5] sm:$0xff]  ;;  %v60_v1 = vld [vmem:[#allocation5 + $0x8] sm:$0xff]  ;;  %s217_s1 = smov [#allocation10]  }
  0x27   :  { %v61_v2 = vld [vmem:[#allocation8] sm:$0xff]  ;;  %v62_v3 = vld [vmem:[#allocation8 + $0x8] sm:$0xff]  ;;  %133 = vlog2.f32 %v59_v0  ;;  %v81_v6 = vsub.f32 1.0, %v59_v0  ;;  %v82_v9 = vsub.f32 1.0, %v60_v1  ;;  %s115_s6 = sshll.u32 %s217_s1, 4  ;;  %s116_s6 = int_to_ptr.vmem [resolvable:$true] %s115_s6 }
  0x28   :  { %v64_v4 = vmul.f32 %v61_v2, %v59_v0  ;;  %v70_v5 = vadd.f32 %v61_v2, %v59_v0  ;;  %v65_v7 = vmul.f32 %v62_v3, %v60_v1  ;;  %135 = vlog2.f32 %v60_v1  ;;  %s185_s7 = scalar_lea.vmem %s116_s6, 384  ;;  %p190_p3 = scmp.lt.s32.totalorder %s116_s6, %s116_s6 }
  0x29   :  { %v71_v8 = vadd.f32 %v62_v3, %v60_v1  ;;  %137 = vlog2.f32 %v81_v6  ;;  %p186_p2 = scmp.ne.s32.totalorder %s116_s6, %s185_s7  ;;  %p191_p4 = scmp.lt.s32.totalorder %s185_s7, %s185_s7 }
  0x2a   :  { %v66_v10 = vadd.f32 %v65_v7, %v64_v4  ;;  %139 = vlog2.f32 %v82_v9 }
  0x2b   :  { %v72_v11 = vadd.f32 %v71_v8, %v70_v5  ;;  %p192_p5 = por %p191_p4, %p190_p3 }
  0x2c   :  { %103 = vst [vmem:[#allocation10] sm:$0xff] %v66_v10 }
  0x2d   :  { %106 = vst [vmem:[#allocation10 + $0x8] sm:$0xff] %v72_v11  ;;  %p193_p6 = pnand %p192_p5, %p186_p2 }
  0x31   :  { %v134_v12 = vpop.eup %133 }
  0x32   :  { %v136_v13 = vpop.eup %135  ;;  %v76_v14 = vmul.f32 0.6931472, %v134_v12 }
  0x33   :  { %v138_v15 = vpop.eup %137  ;;  %v78_v16 = vmul.f32 0.6931472, %v136_v13 }
  0x34   :  { %v140_v17 = vpop.eup %139  ;;  %v79_v18 = vmax.f32 %v76_v14, -100.0  ;;  %v84_v19 = vmul.f32 0.6931472, %v138_v15 }
  0x35   :  { %v80_v20 = vmax.f32 %v78_v16, -100.0  ;;  %v86_v21 = vmul.f32 0.6931472, %v140_v17 }
  0x36   :  { %v87_v22 = vmax.f32 %v84_v19, -100.0 }
  0x37   :  { %v88_v23 = vmax.f32 %v86_v21, -100.0 }
  0x38   :  { %v90_v24 = vsub.f32 %v79_v18, %v87_v22 }
  0x39   :  { %v91_v25 = vsub.f32 %v80_v20, %v88_v23 }
  0x3a   :  { %v92_v26 = vmul.f32 %v90_v24, %v61_v2 }
  0x3b   :  { %v93_v27 = vmul.f32 %v91_v25, %v62_v3 }
  0x3c   :  { %v94_v28 = vadd.f32 %v92_v26, %v87_v22 }
  0x3d   :  { %v95_v29 = vadd.f32 %v93_v27, %v88_v23 }
  0x3f   :  { %v96_v30 = vadd.f32 %v95_v29, %v94_v28 }
  0x41   :  { %v97_v31 = vsub.f32 0.0, %v96_v30 }
  0x43   :  { %109 = vst [vmem:[#allocation10 + $0x10] sm:$0xff] %v97_v31 }
  0x44   :  { %196 = shalt.err (!%p193_p6)
}
  0x45   :  { %s197_s10 = scalar_lea.hbm %s280_s2, 384 }
  0x46   :  { %p198_p7 = scmp.ne.s32.totalorder %s280_s2, %s197_s10  ;;  %p201_p8 = scmp.lt.u32.totalorder %s197_s10, %s280_s2 }
  0x48   :  { %p203_p9 = pnand %p201_p8, %p198_p7 }
  0x4a   :  { %206 = shalt.err (!%p203_p9)
}
  0x4b   :  { %121 = dma.vmem_to_hbm [thread:$0]  %s116_s6, 384, %s280_s2, [#allocation7], %s214_s19, %s214_s19, %s215_s20  }
  0x4c   :  { %211 = dma.done.wait [#allocation7], 384  }
  0x4d   :  { %212 = vsyncadd [#allocation7], 4294966912 }
  0x4e   :  { %125 = vsyncpa [#allocation6], 1 }
  0x4f   :  { %126 = vsyncpa [#allocation9], 1 }
  0x50   :  { %127 = vsyncpa [#allocation7], 1 }

</bundles_post_ra>
